<compile_context>
chip_gen: v7x
topology: tpu7x:2x2x1
jax: 0.10.0
libtpu: 0.0.40
codegen_flags: <defaults>
</compile_context>

<pallas_src>
import jax
import jax.numpy as jnp
import numpy as np
from jax.experimental import pallas as pl
from jax.experimental.pallas import tpu as pltpu

# ----------------------------- module constants -----------------------------
TO_BIT = 8
BIAS_BIT = 32


def signed_minmax(bit):
    return -(2 ** (bit - 1)), 2 ** (bit - 1) - 1


Qn, Qp = signed_minmax(TO_BIT)        # (-128, 127)
bQn, bQp = signed_minmax(BIAS_BIT)    # (-2**31, 2**31 - 1)
# NOTE: bQp = 2**31 - 1 rounds to 2**31 in float32; harmless while b_int stays
# float (same as the PyTorch reference clamp).

_VMEM_LIMIT = 48 * 1024 * 1024        # explicit scoped-VMEM cap (safe all gens)


def _round_up(x, m):
    return ((x + m - 1) // m) * m


# ------------------------------- Pallas kernels ------------------------------
def _fold_kernel(g_ref, f_ref, w_ref, amax_ref):
    """weight[:, j-block] = gamma2_w @ fc2_w[:, j-block]; fused per-tile max|w|."""
    w = jnp.dot(g_ref[...], f_ref[...], preferred_element_type=jnp.float32)
    w_ref[...] = w
    # Observer partial: lane-wide (1, tn) max of |w| (sublane-only XLU reduce);
    # rides in the epilogue while the MXU is the binding unit.
    amax_ref[...] = jnp.max(jnp.abs(w), axis=0, keepdims=True)


def _quant_kernel(ws_ref, w_ref, oi_ref, ob_ref):
    """w_int = round(clamp(weight / w_s, Qn, Qp)).

    Emitted twice in one pass: f32 (module buffer, reference layout) and bf16
    (matmul operand; lossless for 8-bit integer values).  True division keeps
    bit parity with the PyTorch reference on rounding boundaries.
    """
    w_s = ws_ref[0]
    q = jnp.round(jnp.clip(w_ref[...] / w_s, float(Qn), float(Qp)))
    oi_ref[...] = q
    ob_ref[...] = q.astype(jnp.bfloat16)


def _linear_kernel(sc_ref, x_ref, w_ref, b_ref, o_ref):
    """out tile = ((x_tile * inv_a_s) @ w_int.T + b_int) * b_s.

    w_ref holds the full (C_out, C_in) bf16 weight resident in VMEM; the dot
    contracts the last dim of both operands, so no transpose is materialised.
    x * inv_a_s is integer-valued (the dequant scale cancels), so the bf16
    cast is lossless and the MXU runs at the bf16 rate with an f32 accumulator.
    """
    inv_a = sc_ref[0]
    b_s = sc_ref[1]
    x_q = (x_ref[...] * inv_a).astype(jnp.bfloat16)
    acc = jax.lax.dot_general(
        x_q, w_ref[...],
        dimension_numbers=(((1,), (1,)), ((), ())),   # contract K on both sides
        preferred_element_type=jnp.float32)
    o_ref[...] = ((acc + b_ref[...]) * b_s).astype(o_ref.dtype)


# --------------------------------- wrappers ----------------------------------
def fold_weight_absmax(gamma2_w, fc2_w, tn=512):
    """weight = gamma2_w @ fc2_w with a fused per-column-block max|weight| row."""
    C_out, C_in = fc2_w.shape
    tn_ = min(tn, _round_up(C_in, 128))
    grid = (pl.cdiv(C_in, tn_),)
    ce = pl.CostEstimate(
        flops=2 * C_out * C_out * C_in,
        transcendentals=0,
        bytes_accessed=4 * (C_out * C_out + 2 * C_out * C_in + C_in))
    weight, amax_row = pl.pallas_call(
        _fold_kernel,
        out_shape=(jax.ShapeDtypeStruct((C_out, C_in), jnp.float32),
                   jax.ShapeDtypeStruct((1, C_in), jnp.float32)),
        grid=grid,
        in_specs=[pl.BlockSpec((C_out, C_out), lambda j: (0, 0)),   # resident
                  pl.BlockSpec((C_out, tn_), lambda j: (0, j))],    # streamed
        out_specs=(pl.BlockSpec((C_out, tn_), lambda j: (0, j)),
                   pl.BlockSpec((1, tn_), lambda j: (0, j))),
        compiler_params=pltpu.CompilerParams(
            dimension_semantics=("parallel",),
            vmem_limit_bytes=_VMEM_LIMIT),
        cost_estimate=ce,
    )(gamma2_w.astype(jnp.float32), fc2_w.astype(jnp.float32))
    return weight, amax_row


def quantize_weight(weight, w_s, tr=256):
    """round(clamp(weight / w_s, Qn, Qp)) -> (f32 buffer, bf16 matmul operand)."""
    C_out, C_in = weight.shape
    tr_ = min(tr, _round_up(C_out, 16))      # 16: bf16 sublane packing
    grid = (pl.cdiv(C_out, tr_),)
    ws = jnp.asarray(w_s, jnp.float32).reshape(1)
    w_int, w_int_bf16 = pl.pallas_call(
        _quant_kernel,
        out_shape=(jax.ShapeDtypeStruct((C_out, C_in), jnp.float32),
                   jax.ShapeDtypeStruct((C_out, C_in), jnp.bfloat16)),
        grid=grid,
        in_specs=[pl.BlockSpec(memory_space=pltpu.SMEM),
                  pl.BlockSpec((tr_, C_in), lambda i: (i, 0))],
        out_specs=(pl.BlockSpec((tr_, C_in), lambda i: (i, 0)),
                   pl.BlockSpec((tr_, C_in), lambda i: (i, 0))),
        compiler_params=pltpu.CompilerParams(
            dimension_semantics=("parallel",),
            vmem_limit_bytes=_VMEM_LIMIT),
    )(ws, weight)
    return w_int, w_int_bf16


def quantized_linear(x, w_int_bf16, b_int, inv_a_s, b_s, tm=256):
    """((x * inv_a_s) @ w_int.T + b_int) * b_s, weight-stationary on the MXU."""
    M, K = x.shape
    N, K2 = w_int_bf16.shape
    assert K == K2
    tm_ = min(tm, _round_up(M, 8))
    grid = (pl.cdiv(M, tm_),)                 # ragged last M block is masked
    scalars = jnp.stack([jnp.asarray(inv_a_s, jnp.float32),
                         jnp.asarray(b_s, jnp.float32)])
    bias_row = jnp.asarray(b_int, jnp.float32).reshape(1, N)
    ce = pl.CostEstimate(
        flops=2 * M * N * K,
        transcendentals=0,
        bytes_accessed=4 * M * K + 2 * N * K + 4 * M * N + 4 * N)
    return pl.pallas_call(
        _linear_kernel,
        out_shape=jax.ShapeDtypeStruct((M, N), jnp.float32),
        grid=grid,
        in_specs=[pl.BlockSpec(memory_space=pltpu.SMEM),          # [inv_a_s, b_s]
                  pl.BlockSpec((tm_, K), lambda i: (i, 0)),       # x tiles stream
                  pl.BlockSpec((N, K), lambda i: (0, 0)),         # resident weight
                  pl.BlockSpec((1, N), lambda i: (0, 0))],        # resident bias
        out_specs=pl.BlockSpec((tm_, N), lambda i: (i, 0)),
        compiler_params=pltpu.CompilerParams(
            dimension_semantics=("parallel",),                    # megacore on v7x
            vmem_limit_bytes=_VMEM_LIMIT),
        cost_estimate=ce,
    )(scalars, x.astype(jnp.float32), w_int_bf16, bias_row)


# ------------------------------ module forward --------------------------------
def qcrosslayer2_forward_train(x, a_s, fc2_w, fc2_b, gamma2_w):
    """Training-mode QCrossLayer2.forward.

    x: (R, C_in) flattened tokens; fc2_w: (C_out, C_in); fc2_b: (C_out,);
    gamma2_w: (C_out, C_out).  Returns (out, b_s, buffers{w_int, b_int}).
    """
    a_s = jnp.asarray(a_s, jnp.float32)

    # --- fold: weight = gamma2_w @ fc2_w (MXU, fused max|weight|);
    #     bias = gamma2_w @ fc2_b is a tiny matvec -> plain JAX ---
    weight, amax_row = fold_weight_absmax(gamma2_w, fc2_w)
    bias = jnp.asarray(gamma2_w, jnp.float32) @ jnp.asarray(fc2_b, jnp.float32)

    # --- LSQObserver(mode='minmax') calibration step ---
    # TODO(synk): get_scale_func('minmax') body is not given in the spec; the
    # symmetric rule w_s = max|w| / Qp is used.  The observer's stateful
    # counter / EMA momentum / debug print and the grad_scale / round_pass STEs
    # (backward-only) are not modeled.
    w_s = jnp.max(amax_row) / jnp.float32(Qp)
    b_s = w_s * a_s

    # --- quantize folded weight / bias ---
    w_int, w_int_bf16 = quantize_weight(weight, w_s)
    b_int = jnp.round(jnp.clip(bias / b_s, float(bQn), float(bQp)))

    # --- out = F.linear(x / a_s, w_int, b_int) * b_s, one fused kernel ---
    # (x * (1/a_s) instead of x / a_s: <=1 ulp apart and snapped by the exact
    #  bf16 integer cast, so the MXU sees the same quantized activations.)
    out = quantized_linear(x, w_int_bf16, b_int, 1.0 / a_s, b_s)
    return out, b_s, dict(w_int=w_int, b_int=b_int)


def qcrosslayer2_forward_eval(x, w_int, b_int):
    """Eval-mode QCrossLayer2.forward: F.linear(x, w_int, b_int)."""
    # A deployed module would store the bf16 weight directly; this one-off cast
    # is lossless for 8-bit integer values.
    w_bf16 = jnp.asarray(w_int).astype(jnp.bfloat16)
    out = quantized_linear(jnp.asarray(x, jnp.float32), w_bf16,
                           jnp.asarray(b_int, jnp.float32), 1.0, 1.0)
    return out, None


# ------------------------------ pure-JAX reference ----------------------------
def _ref_train(x, a_s, fc2_w, fc2_b, gamma2_w):
    x_q = x / a_s
    weight = gamma2_w @ fc2_w
    bias = gamma2_w @ fc2_b
    w_s = jnp.max(jnp.abs(weight)) / jnp.float32(Qp)
    b_s = w_s * a_s
    w_int = jnp.round(jnp.clip(weight / w_s, float(Qn), float(Qp)))
    b_int = jnp.round(jnp.clip(bias / b_s, float(bQn), float(bQp)))
    out = (x_q @ w_int.T + b_int) * b_s
    return out, b_s, w_int, b_int


# ------------------------------------ main ------------------------------------
if __name__ == "__main__":
    # Small DeiT-like shapes; hidden dims are multiples of 128 so all tiles are
    # lane-dense.  Data sits on power-of-two grids so the reference comparison
    # is not polluted by accumulation-order noise.
    B, N_tok = 2, 8
    C_in, C_out = 256, 128          # fc2: in_features=256, out_features=128

    key = jax.random.PRNGKey(0)
    k1, k2, k3, k4 = jax.random.split(key, 4)

    a_s = jnp.float32(2.0 ** -7)
    x_int = jax.random.randint(k1, (B, N_tok, C_in), -100, 101).astype(jnp.float32)
    x = (x_int * a_s).reshape(B * N_tok, C_in)
    fc2_w = jax.random.randint(k2, (C_out, C_in), -3, 4).astype(jnp.float32) * 0.125
    fc2_b = jax.random.randint(k3, (C_out,), -8, 9).astype(jnp.float32) * 0.015625
    gamma2_w = jax.random.randint(k4, (C_out, C_out), -2, 3).astype(jnp.float32) * 0.125

    # --- training forward ---
    out, b_s, buffers = qcrosslayer2_forward_train(x, a_s, fc2_w, fc2_b, gamma2_w)
    jax.block_until_ready((out, b_s, buffers["w_int"], buffers["b_int"]))

    ref_out, ref_b_s, ref_w_int, ref_b_int = _ref_train(x, a_s, fc2_w, fc2_b, gamma2_w)
    np.testing.assert_allclose(np.asarray(out), np.asarray(ref_out),
                               rtol=1e-5, atol=1e-4)
    np.testing.assert_allclose(float(b_s), float(ref_b_s), rtol=1e-6)
    np.testing.assert_allclose(np.asarray(buffers["w_int"]), np.asarray(ref_w_int),
                               rtol=0, atol=0)
    np.testing.assert_allclose(np.asarray(buffers["b_int"]), np.asarray(ref_b_int),
                               rtol=0, atol=0)

    # --- eval forward, reusing the integer buffers produced in training ---
    x_eval = x / a_s                # integer-valued activation fed at eval time
    out_eval, _ = qcrosslayer2_forward_eval(x_eval, buffers["w_int"], buffers["b_int"])
    jax.block_until_ready(out_eval)
    ref_eval = x_eval @ ref_w_int.T + ref_b_int
    np.testing.assert_allclose(np.asarray(out_eval), np.asarray(ref_eval),
                               rtol=1e-5, atol=1e-4)

    print("KERNEL_OK")
</pallas_src>

<mosaic_0001>
module attributes {stable_mosaic.version = 11 : i64} {
  func.func @_fold_kernel(%arg0: i32, %arg1: memref<128x128xf32, #tpu.memory_space<vmem>>, %arg2: memref<128x256xf32, #tpu.memory_space<vmem>>, %arg3: memref<128x256xf32, #tpu.memory_space<vmem>>, %arg4: memref<1x256xf32, #tpu.memory_space<vmem>>) attributes {dimension_semantics = [#tpu.dimension_semantics<parallel>], iteration_bounds = array<i64: 1>, scalar_prefetch = 0 : i64, scratch_operands = 0 : i64, tpu.core_type = #tpu.core_type<tc>, window_params = [{pipeline_mode = #tpu.pipeline_mode<synchronous>, transform_indices = @transform_0, window_bounds = array<i64: 128, 128>}, {transform_indices = @transform_1, window_bounds = array<i64: 128, 256>}, {transform_indices = @transform_2, window_bounds = array<i64: 128, 256>}, {transform_indices = @transform_3, window_bounds = array<i64: 1, 256>}]} {
    %c0 = arith.constant 0 : index
    %c0_0 = arith.constant 0 : index
    %0 = vector.load %arg1[%c0, %c0_0] : memref<128x128xf32, #tpu.memory_space<vmem>>, vector<128x128xf32>
    %c0_1 = arith.constant 0 : index
    %c0_2 = arith.constant 0 : index
    %1 = vector.load %arg2[%c0_1, %c0_2] : memref<128x256xf32, #tpu.memory_space<vmem>>, vector<128x256xf32>
    %cst = arith.constant dense<0.000000e+00> : vector<128x256xf32>
    %2 = tpu.matmul %0, %1, %cst {dimension_numbers = #tpu.dot_dimension_numbers<[1], [0], [0], [1], [0, 0, 1, 1], [], []>} : vector<128x128xf32>, vector<128x256xf32>, vector<128x256xf32> -> vector<128x256xf32>
    %c0_3 = arith.constant 0 : index
    %c0_4 = arith.constant 0 : index
    %3 = vector.load %arg3[%c0_3, %c0_4] : memref<128x256xf32, #tpu.memory_space<vmem>>, vector<128x256xf32>
    tpu.vector_store %arg3[%c0_3, %c0_4], %2 {strides = array<i32>} : memref<128x256xf32, #tpu.memory_space<vmem>>, vector<128x256xf32>,
    %4 = math.absf %2 : vector<128x256xf32>
    %cst_5 = arith.constant dense<0xFF800000> : vector<256xf32>
    %5 = vector.multi_reduction <maximumf>, %4, %cst_5 [0] : vector<128x256xf32> to vector<256xf32>
    %6 = vector.shape_cast %5 : vector<256xf32> to vector<1x256xf32>
    %c0_6 = arith.constant 0 : index
    %c0_7 = arith.constant 0 : index
    %7 = vector.load %arg4[%c0_6, %c0_7] : memref<1x256xf32, #tpu.memory_space<vmem>>, vector<1x256xf32>
    tpu.vector_store %arg4[%c0_6, %c0_7], %6 {strides = array<i32>} : memref<1x256xf32, #tpu.memory_space<vmem>>, vector<1x256xf32>,
    return
  }
  func.func @transform_0(%arg0: i32) -> (i32, i32) {
    %c0_i32 = arith.constant 0 : i32
    %c0_i32_0 = arith.constant 0 : i32
    %c0_i32_1 = arith.constant 0 : i32
    return %c0_i32, %c0_i32_0 : i32, i32
  }
  func.func @transform_1(%arg0: i32) -> (i32, i32) {
    %c0_i32 = arith.constant 0 : i32
    %c0_i32_0 = arith.constant 0 : i32
    return %c0_i32, %arg0 : i32, i32
  }
  func.func @transform_2(%arg0: i32) -> (i32, i32) {
    %c0_i32 = arith.constant 0 : i32
    %c0_i32_0 = arith.constant 0 : i32
    return %c0_i32, %arg0 : i32, i32
  }
  func.func @transform_3(%arg0: i32) -> (i32, i32) {
    %c0_i32 = arith.constant 0 : i32
    %c0_i32_0 = arith.constant 0 : i32
    return %c0_i32, %arg0 : i32, i32
  }
}

</mosaic_0001>

<bundles_post_ra>
// kernel: tpu_custom_call.1
= control target key start
LH: loop header
LB: loop body
LE: loop exit
PB: predicated region body
PF: predicated region fallthrough
CT: control target
= control target key end

     0   :  { %9 = vsyncpa [#allocation3], 0  ;;  %s709_s0 = inlined_call_operand.hbm [shape: f32[128,128], index: 0, kind: input, shape index: {}]   ;;  %s710_s1 = inlined_call_operand.hbm [shape: f32[128,256], index: 1, kind: input, shape index: {}]   ;;  %s711_s2 = inlined_call_operand.hbm [shape: f32[128,256], index: 2, kind: output, shape index: {0}]   ;;  %s712_s3 = inlined_call_operand.hbm [shape: f32[1,256], index: 3, kind: output, shape index: {1}]  }
   0x1   :  { %10 = vsyncpa [#allocation6], 0 }
   0x2   :  { %11 = vsyncpa [#allocation4], 0 }
   0x3   :  { %12 = vsyncpa [#allocation9], 0  ;;  %s585_s12 = smov [#allocation2]   ;;  %s471_s16 = scalar_lea.hbm %s709_s0, 2048 }
   0x4   :  { %s18_s13 = sshll.u32 %s585_s12, 4  ;;  %p472_p0 = scmp.ne.s32.totalorder %s709_s0, %s471_s16  ;;  %s19_s13 = int_to_ptr.vmem [resolvable:$true] %s18_s13 }
   0x5   :  { %p475_p1 = scmp.lt.u32.totalorder %s471_s16, %s709_s0 }
   0x7   :  { %p477_p2 = pnand %p475_p1, %p472_p0 }
   0x9   :  { %480 = shalt.err (!%p477_p2)
}
   0xa   :  { %s481_s21 = scalar_lea.vmem %s19_s13, 2048  ;;  %p486_p4 = scmp.lt.s32.totalorder %s19_s13, %s19_s13 }
   0xb   :  { %p482_p3 = scmp.ne.s32.totalorder %s19_s13, %s481_s21  ;;  %p487_p5 = scmp.lt.s32.totalorder %s481_s21, %s481_s21 }
   0xd   :  { %p488_p6 = por %p487_p5, %p486_p4 }
   0xf   :  { %p489_p7 = pnand %p488_p6, %p482_p3 }
  0x11   :  { %492 = shalt.err (!%p489_p7)
}
  0x12   :  { %s586_s22 = smov 128   ;;  %s587_s23 = smov 8  }
  0x13   :  { %24 = dma.hbm_to_vmem [thread:$0]  %s709_s0, 2048, %s19_s13, [#allocation3], %s586_s22, %s586_s22, %s587_s23  }
  0x14   :  { %s588_s26 = smov [#allocation5]   ;;  %s493_s30 = scalar_lea.hbm %s710_s1, 4096 }
  0x15   :  { %s30_s27 = sshll.u32 %s588_s26, 4  ;;  %p494_p8 = scmp.ne.s32.totalorder %s710_s1, %s493_s30  ;;  %s31_s27 = int_to_ptr.vmem [resolvable:$true] %s30_s27 }
  0x16   :  { %p497_p9 = scmp.lt.u32.totalorder %s493_s30, %s710_s1 }
  0x18   :  { %p499_p10 = pnand %p497_p9, %p494_p8 }
  0x1a   :  { %502 = shalt.err (!%p499_p10)
}
  0x1b   :  { %s503_s8 = scalar_lea.vmem %s31_s27, 4096  ;;  %p508_p12 = scmp.lt.s32.totalorder %s31_s27, %s31_s27 }
  0x1c   :  { %p504_p11 = scmp.ne.s32.totalorder %s31_s27, %s503_s8  ;;  %p509_p13 = scmp.lt.s32.totalorder %s503_s8, %s503_s8 }
  0x1e   :  { %p510_p0 = por %p509_p13, %p508_p12 }
  0x20   :  { %p511_p1 = pnand %p510_p0, %p504_p11 }
  0x22   :  { %514 = shalt.err (!%p511_p1)
}
  0x23   :  { %s589_s0 = smov 256   ;;  %s590_s9 = smov 16  }
  0x24   :  { %36 = dma.hbm_to_vmem [thread:$0]  %s710_s1, 4096, %s31_s27, [#allocation6], %s589_s0, %s589_s0, %s590_s9  }
  0x25   :  { %559 = dma.done.wait [#allocation3], 2048  }
  0x26   :  { %560 = vsyncadd [#allocation3], 4294965248 }
  0x27   :  { %561 = dma.done.wait [#allocation6], 4096  }
  0x28   :  { %562 = vsyncadd [#allocation6], 4294963200  ;;  %v591_v0 = vmov 0.0   ;;  %v60_v1 = vld [vmem:[#allocation5 + $0x8] sm:$0xff]  ;;  %v62_v2 = vld [vmem:[#allocation5 + $0x18] sm:$0xff]  ;;  %s592_s1 = smov [#allocation7]  }
  0x29   :  { %155 = vmatprep.mubr.f32.mxu0 %v591_v0  ;;  %203 = vmatprep.mubr.f32.mxu1 %v591_v0  ;;  %v59_v3 = vld [vmem:[#allocation5] sm:$0xff]  ;;  %v413_v4 = vpack.c.bf16 %v62_v2, %v60_v1  ;;  %v61_v5 = vld [vmem:[#allocation5 + $0x10] sm:$0xff]  ;;  %v64_v6 = vld [vmem:[#allocation5 + $0x28] sm:$0xff]  ;;  %s386_s12 = sshll.u32 %s592_s1, 4  ;;  %s387_s12 = int_to_ptr.vmem [resolvable:$true] %s386_s12 }
  0x2a   :  { %v66_v7 = vld [vmem:[#allocation5 + $0x38] sm:$0xff]  ;;  %v415_v8 = vpack.c.bf16 %v61_v5, %v59_v3  ;;  %v63_v10 = vld [vmem:[#allocation5 + $0x20] sm:$0xff]  ;;  %v65_v11 = vld [vmem:[#allocation5 + $0x30] sm:$0xff]  ;;  %s515_s13 = scalar_lea.vmem %s387_s12, 4096  ;;  %p520_p3 = scmp.lt.s32.totalorder %s387_s12, %s387_s12 }
  0x2b   :  { %v417_v9 = vpack.c.bf16 %v66_v7, %v64_v6  ;;  %v68_v12 = vld [vmem:[#allocation5 + $0x48] sm:$0xff]  ;;  %414 = vmatprep.subr.bf16.mxu0 %v413_v4  ;;  %445 = vmatprep.subr.bf16.mxu1 %v413_v4  ;;  %v70_v13 = vld [vmem:[#allocation5 + $0x58] sm:$0xff]  ;;  %v419_v14 = vpack.c.bf16 %v65_v11, %v63_v10  ;;  %v67_v16 = vld [vmem:[#allocation5 + $0x40] sm:$0xff]  ;;  %p516_p2 = scmp.ne.s32.totalorder %s387_s12, %s515_s13  ;;  %p521_p4 = scmp.lt.s32.totalorder %s515_s13, %s515_s13 }
  0x2c   :  { %416 = vmatpush1.bf16.msra.mxu0 %v415_v8  ;;  %453 = vmatpush1.bf16.msra.mxu1 %v415_v8  ;;  %v421_v15 = vpack.c.bf16 %v70_v13, %v68_v12  ;;  %v69_v17 = vld [vmem:[#allocation5 + $0x50] sm:$0xff]  ;;  %v72_v18 = vld [vmem:[#allocation5 + $0x68] sm:$0xff]  ;;  %v74_v19 = vld [vmem:[#allocation5 + $0x78] sm:$0xff] }
  0x2d   :  { %418 = vmatprep.subr.bf16.mxu0 %v417_v9  ;;  %446 = vmatprep.subr.bf16.mxu1 %v417_v9  ;;  %v423_v20 = vpack.c.bf16 %v69_v17, %v67_v16  ;;  %v425_v21 = vpack.c.bf16 %v74_v19, %v72_v18  ;;  %v71_v22 = vld [vmem:[#allocation5 + $0x60] sm:$0xff]  ;;  %v73_v23 = vld [vmem:[#allocation5 + $0x70] sm:$0xff]  ;;  %v76_v24 = vld [vmem:[#allocation5 + $0x88] sm:$0xff]  ;;  %p522_p5 = por %p521_p4, %p520_p3 }
  0x2e   :  { %v78_v25 = vld [vmem:[#allocation5 + $0x98] sm:$0xff]  ;;  %v427_v26 = vpack.c.bf16 %v73_v23, %v71_v22  ;;  %v75_v28 = vld [vmem:[#allocation5 + $0x80] sm:$0xff]  ;;  %v77_v29 = vld [vmem:[#allocation5 + $0x90] sm:$0xff] }
  0x2f   :  { %v429_v27 = vpack.c.bf16 %v78_v25, %v76_v24  ;;  %v80_v30 = vld [vmem:[#allocation5 + $0xa8] sm:$0xff]  ;;  %v82_v31 = vld [vmem:[#allocation5 + $0xb8] sm:$0xff]  ;;  %v431_v32 = vpack.c.bf16 %v77_v29, %v75_v28  ;;  %v79_v34 = vld [vmem:[#allocation5 + $0xa0] sm:$0xff]  ;;  %p523_p6 = pnand %p522_p5, %p516_p2 }
  0x30   :  { %420 = vmatpush1.bf16.msra.mxu0 %v419_v14  ;;  %454 = vmatpush1.bf16.msra.mxu1 %v419_v14  ;;  %v433_v33 = vpack.c.bf16 %v82_v31, %v80_v30  ;;  %v81_v35 = vld [vmem:[#allocation5 + $0xb0] sm:$0xff]  ;;  %v84_v36 = vld [vmem:[#allocation5 + $0xc8] sm:$0xff]  ;;  %v86_v37 = vld [vmem:[#allocation5 + $0xd8] sm:$0xff] }
  0x31   :  { %422 = vmatprep.subr.bf16.mxu0 %v421_v15  ;;  %447 = vmatprep.subr.bf16.mxu1 %v421_v15  ;;  %v435_v38 = vpack.c.bf16 %v81_v35, %v79_v34  ;;  %v437_v39 = vpack.c.bf16 %v86_v37, %v84_v36  ;;  %v83_v40 = vld [vmem:[#allocation5 + $0xc0] sm:$0xff]  ;;  %v85_v41 = vld [vmem:[#allocation5 + $0xd0] sm:$0xff]  ;;  %v88_v42 = vld [vmem:[#allocation5 + $0xe8] sm:$0xff] }
  0x32   :  { %v90_v43 = vld [vmem:[#allocation5 + $0xf8] sm:$0xff]  ;;  %v439_v44 = vpack.c.bf16 %v85_v41, %v83_v40  ;;  %v87_v46 = vld [vmem:[#allocation5 + $0xe0] sm:$0xff]  ;;  %v89_v47 = vld [vmem:[#allocation5 + $0xf0] sm:$0xff] }
  0x33   :  { %v441_v45 = vpack.c.bf16 %v90_v43, %v88_v42  ;;  %v443_v48 = vpack.c.bf16 %v89_v47, %v87_v46  ;;  %v43_v49 = vld [vmem:[#allocation2] sm:$0xff]  ;;  %v44_v51 = vld [vmem:[#allocation2 + $0x8] sm:$0xff]  ;;  %v45_v53 = vld [vmem:[#allocation2 + $0x10] sm:$0xff] }
  0x34   :  { %424 = vmatpush1.bf16.msra.mxu0 %v423_v20  ;;  %455 = vmatpush1.bf16.msra.mxu1 %v423_v20  ;;  %v51_v50 = vld [vmem:[#allocation2 + $0x40] sm:$0xff]  ;;  %v52_v52 = vld [vmem:[#allocation2 + $0x48] sm:$0xff]  ;;  %v53_v54 = vld [vmem:[#allocation2 + $0x50] sm:$0xff] }
  0x35   :  { %426 = vmatprep.subr.bf16.mxu0 %v425_v21  ;;  %448 = vmatprep.subr.bf16.mxu1 %v425_v21  ;;  %v46_v55 = vld [vmem:[#allocation2 + $0x18] sm:$0xff]  ;;  %v47_v57 = vld [vmem:[#allocation2 + $0x20] sm:$0xff]  ;;  %v48_v59 = vld [vmem:[#allocation2 + $0x28] sm:$0xff] }
  0x36   :  { %v54_v56 = vld [vmem:[#allocation2 + $0x58] sm:$0xff]  ;;  %v55_v58 = vld [vmem:[#allocation2 + $0x60] sm:$0xff]  ;;  %v56_v60 = vld [vmem:[#allocation2 + $0x68] sm:$0xff] }
  0x37   :  { %v49_v61 = vld [vmem:[#allocation2 + $0x30] sm:$0xff]  ;;  %v50_v63 = vld [vmem:[#allocation2 + $0x38] sm:$0xff] }
  0x38   :  { %428 = vmatpush1.bf16.msra.mxu0 %v427_v26  ;;  %456 = vmatpush1.bf16.msra.mxu1 %v427_v26  ;;  %v57_v62 = vld [vmem:[#allocation2 + $0x70] sm:$0xff]  ;;  %v58_v1 = vld [vmem:[#allocation2 + $0x78] sm:$0xff] }
  0x39   :  { %430 = vmatprep.subr.bf16.mxu0 %v429_v27  ;;  %449 = vmatprep.subr.bf16.mxu1 %v429_v27 }
  0x3c   :  { %432 = vmatpush1.bf16.msra.mxu0 %v431_v32  ;;  %457 = vmatpush1.bf16.msra.mxu1 %v431_v32 }
  0x3d   :  { %434 = vmatprep.subr.bf16.mxu0 %v433_v33  ;;  %450 = vmatprep.subr.bf16.mxu1 %v433_v33 }
  0x40   :  { %436 = vmatpush1.bf16.msra.mxu0 %v435_v38  ;;  %458 = vmatpush1.bf16.msra.mxu1 %v435_v38 }
  0x41   :  { %438 = vmatprep.subr.bf16.mxu0 %v437_v39  ;;  %451 = vmatprep.subr.bf16.mxu1 %v437_v39 }
  0x44   :  { %440 = vmatpush1.bf16.msra.mxu0 %v439_v44  ;;  %459 = vmatpush1.bf16.msra.mxu1 %v439_v44 }
  0x45   :  { %442 = vmatprep.subr.bf16.mxu0 %v441_v45  ;;  %452 = vmatprep.subr.bf16.mxu1 %v441_v45 }
  0x48   :  { %444 = vmatpush1.bf16.msra.mxu0 %v443_v48  ;;  %460 = vmatpush1.bf16.msra.mxu1 %v443_v48 }
  0x4b   :  { %156 = vmatmul.mubr.f32.vlgmr.msra.gmra.mrb[0].mxu0 %v43_v49  ;;  %204 = vmatmul.mubr.f32.vlgmr.msra.gmra.mrb[0].mxu1 %v51_v50 }
  0x4c   :  { %161 = vmatprep.mubr.f32.mxu0 %v591_v0  ;;  %209 = vmatprep.mubr.f32.mxu1 %v591_v0 }
  0x4f   :  { %162 = vmatmul.mubr.f32.gmra.mrb[2].mxu0 %v44_v51  ;;  %210 = vmatmul.mubr.f32.gmra.mrb[2].mxu1 %v52_v52 }
  0x50   :  { %167 = vmatprep.mubr.f32.mxu0 %v591_v0  ;;  %215 = vmatprep.mubr.f32.mxu1 %v591_v0 }
  0x53   :  { %168 = vmatmul.mubr.f32.gmra.mrb[4].mxu0 %v45_v53  ;;  %216 = vmatmul.mubr.f32.gmra.mrb[4].mxu1 %v53_v54 }
  0x54   :  { %173 = vmatprep.mubr.f32.mxu0 %v591_v0  ;;  %221 = vmatprep.mubr.f32.mxu1 %v591_v0 }
  0x57   :  { %174 = vmatmul.mubr.f32.gmra.mrb[6].mxu0 %v46_v55  ;;  %222 = vmatmul.mubr.f32.gmra.mrb[6].mxu1 %v54_v56 }
  0x58   :  { %179 = vmatprep.mubr.f32.mxu0 %v591_v0  ;;  %227 = vmatprep.mubr.f32.mxu1 %v591_v0 }
  0x5b   :  { %180 = vmatmul.mubr.f32.gmra.mrb[8].mxu0 %v47_v57  ;;  %228 = vmatmul.mubr.f32.gmra.mrb[8].mxu1 %v55_v58 }
  0x5c   :  { %185 = vmatprep.mubr.f32.mxu0 %v591_v0  ;;  %233 = vmatprep.mubr.f32.mxu1 %v591_v0 }
  0x5f   :  { %186 = vmatmul.mubr.f32.gmra.mrb[10].mxu0 %v48_v59  ;;  %234 = vmatmul.mubr.f32.gmra.mrb[10].mxu1 %v56_v60 }
  0x60   :  { %191 = vmatprep.mubr.f32.mxu0 %v591_v0  ;;  %239 = vmatprep.mubr.f32.mxu1 %v591_v0 }
  0x63   :  { %192 = vmatmul.mubr.f32.gmra.mrb[12].mxu0 %v49_v61  ;;  %240 = vmatmul.mubr.f32.gmra.mrb[12].mxu1 %v57_v62 }
  0x64   :  { %197 = vmatprep.mubr.f32.mxu0 %v591_v0  ;;  %245 = vmatprep.mubr.f32.mxu1 %v591_v0 }
  0x67   :  { %198 = vmatmul.mubr.f32.gmra.mrb[14].mxu0 %v50_v63  ;;  %246 = vmatmul.mubr.f32.gmra.mrb[14].mxu1 %v58_v1 }
 0x11e   :  { %v157_v2 = vpop.f32.mrb[0].mxu0  ;;  %v658_v3 = vpop.f32.mrb[0].mxu1 }
 0x11f   :  { %252 = vst [vmem:[#allocation7] sm:$0xff] %v157_v2  ;;  %v159_v4 = vpop.f32.mrb[1].mxu0  ;;  %268 = vst [vmem:[#allocation7 + $0x80] sm:$0xff] %v658_v3  ;;  %v661_v5 = vpop.f32.mrb[1].mxu1 }
 0x120   :  { %253 = vst [vmem:[#allocation7 + $0x8] sm:$0xff] %v159_v4  ;;  %269 = vst [vmem:[#allocation7 + $0x88] sm:$0xff] %v661_v5 }
 0x122   :  { %v163_v6 = vpop.f32.mrb[2].mxu0  ;;  %v664_v7 = vpop.f32.mrb[2].mxu1 }
 0x123   :  { %254 = vst [vmem:[#allocation7 + $0x10] sm:$0xff] %v163_v6  ;;  %v165_v0 = vpop.f32.mrb[3].mxu0  ;;  %270 = vst [vmem:[#allocation7 + $0x90] sm:$0xff] %v664_v7  ;;  %v667_v8 = vpop.f32.mrb[3].mxu1 }
 0x124   :  { %255 = vst [vmem:[#allocation7 + $0x18] sm:$0xff] %v165_v0  ;;  %271 = vst [vmem:[#allocation7 + $0x98] sm:$0xff] %v667_v8 }
 0x126   :  { %v169_v9 = vpop.f32.mrb[4].mxu0  ;;  %v217_v10 = vpop.f32.mrb[4].mxu1 }
 0x127   :  { %256 = vst [vmem:[#allocation7 + $0x20] sm:$0xff] %v169_v9  ;;  %v171_v11 = vpop.f32.mrb[5].mxu0  ;;  %272 = vst [vmem:[#allocation7 + $0xa0] sm:$0xff] %v217_v10  ;;  %v670_v12 = vpop.f32.mrb[5].mxu1  ;;  %567 = vmaxabs.init.f32.vacc0 %v157_v2, %v169_v9 }
 0x128   :  { %257 = vst [vmem:[#allocation7 + $0x28] sm:$0xff] %v171_v11  ;;  %273 = vst [vmem:[#allocation7 + $0xa8] sm:$0xff] %v670_v12  ;;  %576 = vmaxabs.init.f32.vacc1 %v159_v4, %v171_v11 }
 0x12a   :  { %v175_v13 = vpop.f32.mrb[6].mxu0  ;;  %v673_v14 = vpop.f32.mrb[6].mxu1 }
 0x12b   :  { %258 = vst [vmem:[#allocation7 + $0x30] sm:$0xff] %v175_v13  ;;  %v177_v15 = vpop.f32.mrb[7].mxu0  ;;  %274 = vst [vmem:[#allocation7 + $0xb0] sm:$0xff] %v673_v14  ;;  %v225_v16 = vpop.f32.mrb[7].mxu1  ;;  %568 = vmaxabs.f32.vacc0 %v163_v6, %v175_v13 }
 0x12c   :  { %259 = vst [vmem:[#allocation7 + $0x38] sm:$0xff] %v177_v15  ;;  %275 = vst [vmem:[#allocation7 + $0xb8] sm:$0xff] %v225_v16  ;;  %577 = vmaxabs.f32.vacc1 %v165_v0, %v177_v15 }
 0x12e   :  { %v181_v17 = vpop.f32.mrb[8].mxu0  ;;  %v229_v18 = vpop.f32.mrb[8].mxu1 }
 0x12f   :  { %260 = vst [vmem:[#allocation7 + $0x40] sm:$0xff] %v181_v17  ;;  %v183_v19 = vpop.f32.mrb[9].mxu0  ;;  %276 = vst [vmem:[#allocation7 + $0xc0] sm:$0xff] %v229_v18  ;;  %v231_v20 = vpop.f32.mrb[9].mxu1 }
 0x130   :  { %261 = vst [vmem:[#allocation7 + $0x48] sm:$0xff] %v183_v19  ;;  %277 = vst [vmem:[#allocation7 + $0xc8] sm:$0xff] %v231_v20 }
 0x132   :  { %v187_v21 = vpop.f32.mrb[10].mxu0  ;;  %v235_v22 = vpop.f32.mrb[10].mxu1 }
 0x133   :  { %262 = vst [vmem:[#allocation7 + $0x50] sm:$0xff] %v187_v21  ;;  %v189_v23 = vpop.f32.mrb[11].mxu0  ;;  %278 = vst [vmem:[#allocation7 + $0xd0] sm:$0xff] %v235_v22  ;;  %v237_v24 = vpop.f32.mrb[11].mxu1  ;;  %569 = vmaxabs.f32.vacc0 %v181_v17, %v187_v21 }
 0x134   :  { %263 = vst [vmem:[#allocation7 + $0x58] sm:$0xff] %v189_v23  ;;  %279 = vst [vmem:[#allocation7 + $0xd8] sm:$0xff] %v237_v24  ;;  %578 = vmaxabs.f32.vacc1 %v183_v19, %v189_v23 }
 0x136   :  { %v193_v25 = vpop.f32.mrb[12].mxu0  ;;  %v241_v26 = vpop.f32.mrb[12].mxu1 }
 0x137   :  { %264 = vst [vmem:[#allocation7 + $0x60] sm:$0xff] %v193_v25  ;;  %v195_v27 = vpop.f32.mrb[13].mxu0  ;;  %280 = vst [vmem:[#allocation7 + $0xe0] sm:$0xff] %v241_v26  ;;  %v243_v28 = vpop.f32.mrb[13].mxu1  ;;  %570 = vmaxabs.f32.vacc0 %v193_v25, %v658_v3 }
 0x138   :  { %265 = vst [vmem:[#allocation7 + $0x68] sm:$0xff] %v195_v27  ;;  %281 = vst [vmem:[#allocation7 + $0xe8] sm:$0xff] %v243_v28  ;;  %579 = vmaxabs.f32.vacc1 %v195_v27, %v661_v5 }
 0x13a   :  { %v199_v29 = vpop.f32.mrb[14].mxu0  ;;  %v247_v30 = vpop.f32.mrb[14].mxu1 }
 0x13b   :  { %266 = vst [vmem:[#allocation7 + $0x70] sm:$0xff] %v199_v29  ;;  %v201_v31 = vpop.f32.mrb[15].mxu0  ;;  %282 = vst [vmem:[#allocation7 + $0xf0] sm:$0xff] %v247_v30  ;;  %v249_v32 = vpop.f32.mrb[15].mxu1  ;;  %571 = vmaxabs.f32.vacc0 %v199_v29, %v217_v10 }
 0x13c   :  { %267 = vst [vmem:[#allocation7 + $0x78] sm:$0xff] %v201_v31  ;;  %283 = vst [vmem:[#allocation7 + $0xf8] sm:$0xff] %v249_v32 }
 0x13d   :  { %526 = shalt.err (!%p523_p6)
}
 0x13e   :  { %s527_s16 = scalar_lea.hbm %s711_s2, 4096 }
 0x13f   :  { %p528_p7 = scmp.ne.s32.totalorder %s711_s2, %s527_s16  ;;  %p531_p8 = scmp.lt.u32.totalorder %s527_s16, %s711_s2 }
 0x141   :  { %p533_p9 = pnand %p531_p8, %p528_p7 }
 0x143   :  { %536 = shalt.err (!%p533_p9)
}
 0x144   :  { %392 = dma.vmem_to_hbm [thread:$0]  %s387_s12, 4096, %s711_s2, [#allocation4], %s589_s0, %s589_s0, %s590_s9   ;;  %580 = vmaxabs.f32.vacc1 %v201_v31, %v670_v12  ;;  %572 = vmaxabs.f32.vacc0 %v664_v7, %v229_v18  ;;  %v593_v39 = vmov 1966171168   ;;  %v364_v41 = vlaneseq }
 0x145   :  { %v362_v40 = vunpack.c.l.s4 %v593_v39  ;;  %s594_s2 = smov [#allocation8]  }
 0x146   :  { %581 = vmaxabs.f32.vacc1 %v667_v8, %v231_v20  ;;  %573 = vmaxabs.f32.vacc0 %v241_v26, %v673_v14  ;;  %v365_v47 = vshrl.u32 %v364_v41, 7  ;;  %s399_s23 = sshll.u32 %s594_s2, 4  ;;  %vm378_vm0 = vcmp.lt.s32.totalorder %v364_v41, 256  ;;  %s400_s23 = int_to_ptr.vmem [resolvable:$true] %s399_s23 }
 0x147   :  { %v363_v46 = vunpack.c.0.s8 %v362_v40  ;;  %s537_s24 = scalar_lea.vmem %s400_s23, 32  ;;  %p542_p11 = scmp.lt.s32.totalorder %s400_s23, %s400_s23 }
 0x148   :  { %582 = vmaxabs.f32.vacc1 %v243_v28, %v225_v16  ;;  %574 = vmaxabs.f32.vacc0 %v235_v22, %v247_v30  ;;  %p538_p10 = scmp.ne.s32.totalorder %s400_s23, %s537_s24  ;;  %p543_p12 = scmp.lt.s32.totalorder %s537_s24, %s537_s24 }
 0x149   :  { %v366_v52 = vsub.s32 %v363_v46, %v365_v47 }
 0x14a   :  { %583 = vmaxabs.f32.vacc1 %v237_v24, %v249_v32  ;;  %v575_v33 = vmovacc.low.even.vacc0  ;;  %p544_p13 = por %p543_p12, %p542_p11 }
 0x14c   :  { %v584_v34 = vmovacc.low.even.vacc1  ;;  %v331_v35 = vrot.slane %v575_v33, 4  ;;  %p545_p0 = pnand %p544_p13, %p538_p10 }
 0x14e   :  { %v352_v36 = vrot.slane %v584_v34, 4  ;;  %v332_v37 = vmax.f32 %v575_v33, %v331_v35 }
 0x150   :  { %v353_v38 = vmax.f32 %v584_v34, %v352_v36  ;;  %v333_v42 = vrot.slane %v332_v37, 2 }
 0x152   :  { %v354_v43 = vrot.slane %v353_v38, 2  ;;  %v334_v44 = vmax.f32 %v332_v37, %v333_v42 }
 0x154   :  { %v355_v45 = vmax.f32 %v353_v38, %v354_v43  ;;  %v335_v48 = vrot.slane %v334_v44, 1 }
 0x156   :  { %v356_v49 = vrot.slane %v355_v45, 1  ;;  %v336_v50 = vmax.f32 %v334_v44, %v335_v48 }
 0x158   :  { %v357_v51 = vmax.f32 %v355_v45, %v356_v49 }
 0x15a   :  { %v360_v53 = vcombine.low %v336_v50, %v357_v51 }
 0x15c   :  { %v367_v54 = vrot.slane %v360_v53, %v366_v52 }
 0x15e   :  { %v374_v55 = vrot.slane %v367_v54, %v366_v52 }
 0x160   :  { %380 = vst.msk [vmem:[#allocation8] sm:$0x3] %vm378_vm0, %v374_v55 }
 0x161   :  { %548 = shalt.err (!%p545_p0)
}
 0x162   :  { %s549_s27 = scalar_lea.hbm %s712_s3, 32 }
 0x163   :  { %p550_p1 = scmp.ne.s32.totalorder %s712_s3, %s549_s27  ;;  %p553_p2 = scmp.lt.u32.totalorder %s549_s27, %s712_s3 }
 0x165   :  { %p555_p3 = pnand %p553_p2, %p550_p1 }
 0x167   :  { %558 = shalt.err (!%p555_p3)
}
 0x168   :  { %402 = dma.vmem_to_hbm [thread:$0]  %s400_s23, 32, %s712_s3, [#allocation9]  }
 0x169   :  { %563 = dma.done.wait [#allocation4], 4096  }
 0x16a   :  { %564 = vsyncadd [#allocation4], 4294963200 }
 0x16b   :  { %565 = dma.done.wait [#allocation9], 32  }
 0x16c   :  { %566 = vsyncadd [#allocation9], 4294967264 }
 0x16d   :  { %409 = vsyncpa [#allocation3], 1 }
 0x16e   :  { %410 = vsyncpa [#allocation6], 1 }
 0x16f   :  { %411 = vsyncpa [#allocation4], 1 }
 0x170   :  { %412 = vsyncpa [#allocation9], 1 }

</bundles_post_ra>
